<compile_context>
chip_gen: v6e
topology: v6e:2x2x1
jax: 0.10.0
libtpu: 0.0.40
codegen_flags: <defaults>
</compile_context>

<pallas_src>
import numpy as np
import jax
import jax.numpy as jnp
from jax.experimental import pallas as pl
from jax.experimental.pallas import tpu as pltpu


def _round_up(x, m):
    return ((x + m - 1) // m) * m


def _sd_vae_loss_kernel(x_ref, xr_ref, pm_ref, plv_ref, rec_ref, kl_ref):
    """grid = (batch, image_chunk). Outputs are per-batch (8,128) partial sums."""
    c = pl.program_id(1)

    # Cast AFTER the DMA so HBM traffic stays in the source dtype.
    x = x_ref[0].astype(jnp.float32)            # (CHUNK, 128)
    xr = xr_ref[0].astype(jnp.float32)
    rec = jnp.abs(x - xr)
    chunk = rec.shape[0]
    # Fold sublane groups into an (8,128) partial with pure VPU adds
    # (vreg-aligned reshape; no cross-lane XLU reduce per step).
    partial = jnp.sum(rec.reshape(chunk // 8, 8, 128), axis=0)

    @pl.when(c == 0)
    def _():
        rec_ref[0] = partial
        # Diagonal-Gaussian KL to N(0, I), computed once per batch element.
        # Zero-padded tail contributes exactly 0: 0.5*(0 + e^0 - 1 - 0) = 0.
        pm = pm_ref[0].astype(jnp.float32)       # (Dzp128, 128)
        plv = plv_ref[0].astype(jnp.float32)
        kl = 0.5 * (pm * pm + jnp.exp(plv) - 1.0 - plv)
        dz = kl.shape[0]
        kl_ref[0] = jnp.sum(kl.reshape(dz // 8, 8, 128), axis=0)

    @pl.when(c > 0)
    def _():
        rec_ref[0] += partial


def sd_vae_loss(inputs, reconstructions, post_mean, post_logvar, logvar,
                kl_weight, *, chunk_sublanes=1024):
    """inputs/reconstructions: (B, C, H, W); post_mean/post_logvar: (B, Cz, Hz, Wz).

    Returns (total_loss, nll_loss, kl_loss) matching SDVAELoss.forward.
    """
    B = inputs.shape[0]
    D = int(np.prod(inputs.shape[1:]))
    Dz = int(np.prod(post_mean.shape[1:]))

    # Flatten per batch element; keep native dtype (kernel casts after DMA).
    x = inputs.reshape(B, D)
    xr = reconstructions.reshape(B, D)
    pm = post_mean.reshape(B, Dz)
    plv = post_logvar.reshape(B, Dz)

    # ---- image tiling: CHUNK sublanes x 128 lanes per grid step -------------
    d128 = pl.cdiv(D, 128)
    chunk = min(_round_up(chunk_sublanes, 8), _round_up(d128, 8))
    num_chunks = pl.cdiv(d128, chunk)
    dp = num_chunks * chunk * 128
    if dp != D:  # zero padding: |0 - 0| adds 0 to the sum
        x = jnp.pad(x, ((0, 0), (0, dp - D)))
        xr = jnp.pad(xr, ((0, 0), (0, dp - D)))
    x = x.reshape(B, num_chunks * chunk, 128)
    xr = xr.reshape(B, num_chunks * chunk, 128)

    # ---- posterior: one lane-dense slab per batch element, padded to 8k rows -
    dz128 = pl.cdiv(Dz, 128)
    dzp128 = _round_up(dz128, 8)
    dzp = dzp128 * 128
    if dzp != Dz:  # zero padding contributes 0 to the KL (see kernel comment)
        pm = jnp.pad(pm, ((0, 0), (0, dzp - Dz)))
        plv = jnp.pad(plv, ((0, 0), (0, dzp - Dz)))
    pm = pm.reshape(B, dzp128, 128)
    plv = plv.reshape(B, dzp128, 128)

    img_bytes = int(np.dtype(inputs.dtype).itemsize)
    lat_bytes = int(np.dtype(post_mean.dtype).itemsize)
    cost = pl.CostEstimate(
        flops=int(3 * B * dp + 5 * B * dzp),
        transcendentals=int(B * dzp),
        bytes_accessed=int(2 * B * dp * img_bytes + 2 * B * dzp * lat_bytes
                           + 2 * B * 8 * 128 * 4),
    )

    rec_part, kl_part = pl.pallas_call(
        _sd_vae_loss_kernel,
        grid=(B, num_chunks),
        in_specs=[
            pl.BlockSpec((1, chunk, 128), lambda b, c: (b, c, 0)),    # inputs
            pl.BlockSpec((1, chunk, 128), lambda b, c: (b, c, 0)),    # reconstructions
            pl.BlockSpec((1, dzp128, 128), lambda b, c: (b, 0, 0)),   # posterior mean
            pl.BlockSpec((1, dzp128, 128), lambda b, c: (b, 0, 0)),   # posterior logvar
        ],
        out_specs=(
            pl.BlockSpec((1, 8, 128), lambda b, c: (b, 0, 0)),        # per-batch |x-xr| partials
            pl.BlockSpec((1, 8, 128), lambda b, c: (b, 0, 0)),        # per-batch KL partials
        ),
        out_shape=(
            jax.ShapeDtypeStruct((B, 8, 128), jnp.float32),
            jax.ShapeDtypeStruct((B, 8, 128), jnp.float32),
        ),
        compiler_params=pltpu.CompilerParams(
            dimension_semantics=("parallel", "arbitrary")),
        cost_estimate=cost,
    )(x, xr, pm, plv)

    logvar = jnp.asarray(logvar, jnp.float32)
    rec_sum = jnp.sum(rec_part)
    kl_sum = jnp.sum(kl_part)
    # Hoisted logvar terms: sum(|x-xr|/exp(lv) + lv)/B == exp(-lv)*rec_sum/B + lv*D
    nll_loss = jnp.exp(-logvar) * rec_sum / B + logvar * jnp.float32(D)
    kl_loss = kl_sum / B
    total = nll_loss + jnp.float32(kl_weight) * kl_loss
    return total, nll_loss, kl_loss


def _reference(inputs, reconstructions, post_mean, post_logvar, logvar, kl_weight):
    B = inputs.shape[0]
    x = inputs.astype(jnp.float32)
    xr = reconstructions.astype(jnp.float32)
    pm = post_mean.astype(jnp.float32)
    plv = post_logvar.astype(jnp.float32)
    rec = jnp.abs(x - xr)
    nll = rec / jnp.exp(logvar) + logvar
    nll_loss = jnp.sum(nll) / B
    kl = 0.5 * jnp.sum(pm ** 2 + jnp.exp(plv) - 1.0 - plv, axis=(1, 2, 3))
    kl_loss = jnp.sum(kl) / B
    return nll_loss + kl_weight * kl_loss, nll_loss, kl_loss


def _check(inputs, reconstructions, post_mean, post_logvar, logvar, kl_weight,
           rtol=1e-5, atol=1e-4, **kw):
    got = sd_vae_loss(inputs, reconstructions, post_mean, post_logvar,
                      logvar, kl_weight, **kw)
    jax.block_until_ready(got)
    want = _reference(inputs, reconstructions, post_mean, post_logvar,
                      logvar, kl_weight)
    for g, w in zip(got, want):
        np.testing.assert_allclose(np.asarray(g), np.asarray(w), rtol=rtol, atol=atol)
    return got


if __name__ == "__main__":
    key = jax.random.PRNGKey(0)
    k1, k2, k3, k4 = jax.random.split(key, 4)

    # Small shapes consistent with the module (NCHW images, NCHW latents).
    B, C, H, W = 2, 4, 16, 16
    Cz, Hz, Wz = 4, 8, 8

    inputs = jax.random.normal(k1, (B, C, H, W), dtype=jnp.float32)
    reconstructions = jax.random.normal(k2, (B, C, H, W), dtype=jnp.float32)
    post_mean = jax.random.normal(k3, (B, Cz, Hz, Wz), dtype=jnp.float32)
    post_logvar = 0.1 * jax.random.normal(k4, (B, Cz, Hz, Wz), dtype=jnp.float32)

    # Deterministic parameter init per module __init__: logvar = 0 (scalar).
    logvar_param = jnp.zeros((), dtype=jnp.float32)
    kl_weight = 0.5  # args.kl_weight

    # 1) Main check at the module-init parameter value.
    total, nll, kl = _check(inputs, reconstructions, post_mean, post_logvar,
                            logvar_param, kl_weight)

    # 2) Nonzero logvar exercises the hoisted nll formula.
    _check(inputs, reconstructions, post_mean, post_logvar,
           jnp.float32(0.3), kl_weight)

    # 3) Multi-chunk path (forces num_chunks > 1) + bf16 inputs exercise the
    #    in-kernel cast and the chunked accumulation across the "arbitrary" axis.
    k5, k6, k7, k8 = jax.random.split(jax.random.PRNGKey(1), 4)
    inputs2 = jax.random.normal(k5, (2, 4, 32, 32), dtype=jnp.bfloat16)
    recon2 = jax.random.normal(k6, (2, 4, 32, 32), dtype=jnp.bfloat16)
    pm2 = jax.random.normal(k7, (2, 4, 8, 8), dtype=jnp.bfloat16)
    plv2 = (0.1 * jax.random.normal(k8, (2, 4, 8, 8))).astype(jnp.bfloat16)
    _check(inputs2, recon2, pm2, plv2, logvar_param, kl_weight,
           rtol=1e-4, atol=1e-3, chunk_sublanes=8)

    print("KERNEL_OK")
</pallas_src>

<mosaic_0001>
module attributes {stable_mosaic.version = 11 : i64} {
  func.func @_sd_vae_loss_kernel(%arg0: i32, %arg1: i32, %arg2: memref<1x8x128xf32, #tpu.memory_space<vmem>>, %arg3: memref<1x8x128xf32, #tpu.memory_space<vmem>>, %arg4: memref<1x8x128xf32, #tpu.memory_space<vmem>>, %arg5: memref<1x8x128xf32, #tpu.memory_space<vmem>>, %arg6: memref<1x8x128xf32, #tpu.memory_space<vmem>>, %arg7: memref<1x8x128xf32, #tpu.memory_space<vmem>>) attributes {dimension_semantics = [#tpu.dimension_semantics<parallel>, #tpu.dimension_semantics<arbitrary>], iteration_bounds = array<i64: 2, 1>, scalar_prefetch = 0 : i64, scratch_operands = 0 : i64, tpu.core_type = #tpu.core_type<tc>, window_params = [{transform_indices = @transform_0, window_bounds = array<i64: 1, 8, 128>}, {transform_indices = @transform_1, window_bounds = array<i64: 1, 8, 128>}, {transform_indices = @transform_2, window_bounds = array<i64: 1, 8, 128>}, {transform_indices = @transform_3, window_bounds = array<i64: 1, 8, 128>}, {transform_indices = @transform_4, window_bounds = array<i64: 1, 8, 128>}, {transform_indices = @transform_5, window_bounds = array<i64: 1, 8, 128>}]} {
    %c0 = arith.constant 0 : index
    %c0_0 = arith.constant 0 : index
    %c0_1 = arith.constant 0 : index
    %0 = vector.load %arg2[%c0, %c0_0, %c0_1] : memref<1x8x128xf32, #tpu.memory_space<vmem>>, vector<1x8x128xf32>
    %1 = vector.shape_cast %0 : vector<1x8x128xf32> to vector<8x128xf32>
    %c0_2 = arith.constant 0 : index
    %c0_3 = arith.constant 0 : index
    %c0_4 = arith.constant 0 : index
    %2 = vector.load %arg3[%c0_2, %c0_3, %c0_4] : memref<1x8x128xf32, #tpu.memory_space<vmem>>, vector<1x8x128xf32>
    %3 = vector.shape_cast %2 : vector<1x8x128xf32> to vector<8x128xf32>
    %4 = arith.subf %1, %3 : vector<8x128xf32>
    %5 = math.absf %4 : vector<8x128xf32>
    %6 = vector.shape_cast %5 : vector<8x128xf32> to vector<1x8x128xf32>
    %cst = arith.constant dense<0.000000e+00> : vector<8x128xf32>
    %7 = vector.multi_reduction <add>, %6, %cst [0] : vector<1x8x128xf32> to vector<8x128xf32>
    %c0_i32 = arith.constant 0 : i32
    %8 = arith.cmpi eq, %arg1, %c0_i32 : i32
    %9 = arith.extui %8 : i1 to i32
    %c0_i32_5 = arith.constant 0 : i32
    %10 = arith.cmpi ne, %9, %c0_i32_5 : i32
    scf.if %10 {
      %c0_8 = arith.constant 0 : index
      %c0_9 = arith.constant 0 : index
      %c0_10 = arith.constant 0 : index
      %14 = vector.load %arg6[%c0_8, %c0_9, %c0_10] : memref<1x8x128xf32, #tpu.memory_space<vmem>>, vector<1x8x128xf32>
      %15 = vector.shape_cast %14 : vector<1x8x128xf32> to vector<8x128xf32>
      %16 = vector.shape_cast %7 : vector<8x128xf32> to vector<1x8x128xf32>
      tpu.vector_store %arg6[%c0_8, %c0_9, %c0_10], %16 {strides = array<i32>} : memref<1x8x128xf32, #tpu.memory_space<vmem>>, vector<1x8x128xf32>,
      %c0_11 = arith.constant 0 : index
      %c0_12 = arith.constant 0 : index
      %c0_13 = arith.constant 0 : index
      %17 = vector.load %arg4[%c0_11, %c0_12, %c0_13] : memref<1x8x128xf32, #tpu.memory_space<vmem>>, vector<1x8x128xf32>
      %18 = vector.shape_cast %17 : vector<1x8x128xf32> to vector<8x128xf32>
      %c0_14 = arith.constant 0 : index
      %c0_15 = arith.constant 0 : index
      %c0_16 = arith.constant 0 : index
      %19 = vector.load %arg5[%c0_14, %c0_15, %c0_16] : memref<1x8x128xf32, #tpu.memory_space<vmem>>, vector<1x8x128xf32>
      %20 = vector.shape_cast %19 : vector<1x8x128xf32> to vector<8x128xf32>
      %21 = arith.mulf %18, %18 : vector<8x128xf32>
      %22 = math.exp %20 : vector<8x128xf32>
      %23 = arith.addf %21, %22 : vector<8x128xf32>
      %cst_17 = arith.constant 1.000000e+00 : f32
      %24 = vector.broadcast %cst_17 : f32 to vector<8x128xf32>
      %25 = arith.subf %23, %24 : vector<8x128xf32>
      %26 = arith.subf %25, %20 : vector<8x128xf32>
      %cst_18 = arith.constant 5.000000e-01 : f32
      %27 = vector.broadcast %cst_18 : f32 to vector<8x128xf32>
      %28 = arith.mulf %27, %26 : vector<8x128xf32>
      %29 = vector.shape_cast %28 : vector<8x128xf32> to vector<1x8x128xf32>
      %cst_19 = arith.constant dense<0.000000e+00> : vector<8x128xf32>
      %30 = vector.multi_reduction <add>, %29, %cst_19 [0] : vector<1x8x128xf32> to vector<8x128xf32>
      %c0_20 = arith.constant 0 : index
      %c0_21 = arith.constant 0 : index
      %c0_22 = arith.constant 0 : index
      %31 = vector.load %arg7[%c0_20, %c0_21, %c0_22] : memref<1x8x128xf32, #tpu.memory_space<vmem>>, vector<1x8x128xf32>
      %32 = vector.shape_cast %31 : vector<1x8x128xf32> to vector<8x128xf32>
      %33 = vector.shape_cast %30 : vector<8x128xf32> to vector<1x8x128xf32>
      tpu.vector_store %arg7[%c0_20, %c0_21, %c0_22], %33 {strides = array<i32>} : memref<1x8x128xf32, #tpu.memory_space<vmem>>, vector<1x8x128xf32>,
    } else {
    }
    %c0_i32_6 = arith.constant 0 : i32
    %11 = arith.cmpi sgt, %arg1, %c0_i32_6 : i32
    %12 = arith.extui %11 : i1 to i32
    %c0_i32_7 = arith.constant 0 : i32
    %13 = arith.cmpi ne, %12, %c0_i32_7 : i32
    scf.if %13 {
      %c0_8 = arith.constant 0 : index
      %c0_9 = arith.constant 0 : index
      %c0_10 = arith.constant 0 : index
      %14 = vector.load %arg6[%c0_8, %c0_9, %c0_10] : memref<1x8x128xf32, #tpu.memory_space<vmem>>, vector<1x8x128xf32>
      %15 = vector.shape_cast %14 : vector<1x8x128xf32> to vector<8x128xf32>
      %16 = arith.addf %15, %7 : vector<8x128xf32>
      %c0_11 = arith.constant 0 : index
      %c0_12 = arith.constant 0 : index
      %c0_13 = arith.constant 0 : index
      %17 = vector.load %arg6[%c0_11, %c0_12, %c0_13] : memref<1x8x128xf32, #tpu.memory_space<vmem>>, vector<1x8x128xf32>
      %18 = vector.shape_cast %17 : vector<1x8x128xf32> to vector<8x128xf32>
      %19 = vector.shape_cast %16 : vector<8x128xf32> to vector<1x8x128xf32>
      tpu.vector_store %arg6[%c0_11, %c0_12, %c0_13], %19 {strides = array<i32>} : memref<1x8x128xf32, #tpu.memory_space<vmem>>, vector<1x8x128xf32>,
    } else {
    }
    return
  }
  func.func @transform_0(%arg0: i32, %arg1: i32) -> (i32, i32, i32) {
    %c0_i32 = arith.constant 0 : i32
    %c0_i32_0 = arith.constant 0 : i32
    return %arg0, %arg1, %c0_i32 : i32, i32, i32
  }
  func.func @transform_1(%arg0: i32, %arg1: i32) -> (i32, i32, i32) {
    %c0_i32 = arith.constant 0 : i32
    %c0_i32_0 = arith.constant 0 : i32
    return %arg0, %arg1, %c0_i32 : i32, i32, i32
  }
  func.func @transform_2(%arg0: i32, %arg1: i32) -> (i32, i32, i32) {
    %c0_i32 = arith.constant 0 : i32
    %c0_i32_0 = arith.constant 0 : i32
    %c0_i32_1 = arith.constant 0 : i32
    return %arg0, %c0_i32, %c0_i32_0 : i32, i32, i32
  }
  func.func @transform_3(%arg0: i32, %arg1: i32) -> (i32, i32, i32) {
    %c0_i32 = arith.constant 0 : i32
    %c0_i32_0 = arith.constant 0 : i32
    %c0_i32_1 = arith.constant 0 : i32
    return %arg0, %c0_i32, %c0_i32_0 : i32, i32, i32
  }
  func.func @transform_4(%arg0: i32, %arg1: i32) -> (i32, i32, i32) {
    %c0_i32 = arith.constant 0 : i32
    %c0_i32_0 = arith.constant 0 : i32
    %c0_i32_1 = arith.constant 0 : i32
    return %arg0, %c0_i32, %c0_i32_0 : i32, i32, i32
  }
  func.func @transform_5(%arg0: i32, %arg1: i32) -> (i32, i32, i32) {
    %c0_i32 = arith.constant 0 : i32
    %c0_i32_0 = arith.constant 0 : i32
    %c0_i32_1 = arith.constant 0 : i32
    return %arg0, %c0_i32, %c0_i32_0 : i32, i32, i32
  }
}

</mosaic_0001>

<bundles_post_ra>
// kernel: tpu_custom_call.1
= control target key start
LH: loop header
LB: loop body
LE: loop exit
PB: predicated region body
PF: predicated region fallthrough
CT: control target
= control target key end

     0   :  { %s1243_s0 = inlined_call_operand.hbm [shape: f32[2,8,128], index: 0, kind: input, shape index: {}]   ;;  %s1244_s1 = inlined_call_operand.hbm [shape: f32[2,8,128], index: 1, kind: input, shape index: {}]   ;;  %s1245_s2 = inlined_call_operand.hbm [shape: f32[2,8,128], index: 2, kind: input, shape index: {}]   ;;  %s1246_s3 = inlined_call_operand.hbm [shape: f32[2,8,128], index: 3, kind: input, shape index: {}]   ;;  %s1247_s4 = inlined_call_operand.hbm [shape: f32[2,8,128], index: 4, kind: output, shape index: {0}]   ;;  %s1248_s5 = inlined_call_operand.hbm [shape: f32[2,8,128], index: 5, kind: output, shape index: {1}]  }
   0x1   :  { %1254 = sst [smem:[#allocation23_spill]] %s1244_s1 }
   0x2   :  { %11 = vsyncpa [#allocation3], 0 }
   0x3   :  { %13 = vsyncpa [#allocation3 + $0x1], 0 }
   0x4   :  { %14 = vsyncpa [#allocation6], 0 }
   0x5   :  { %16 = vsyncpa [#allocation6 + $0x1], 0 }
   0x6   :  { %17 = vsyncpa [#allocation9], 0 }
   0x7   :  { %19 = vsyncpa [#allocation9 + $0x1], 0 }
   0x8   :  { %20 = vsyncpa [#allocation4], 0 }
   0x9   :  { %22 = vsyncpa [#allocation4 + $0x1], 0 }
   0xa   :  { %23 = vsyncpa [#allocation12], 0 }
   0xb   :  { %25 = vsyncpa [#allocation12 + $0x1], 0  ;;  %s993_s18 = smov 0   ;;  %s995_s19 = smov 0  }
   0xc   :  { %s997_s20 = smov 0   ;;  %s999_s21 = smov 0  }
   0xd   :  { %s1001_s22 = smov 0   ;;  %s1003_s23 = smov 0  }
   0xe LB: > { %1255 = sst [smem:[#allocation18_spill]] %s943_s20  ;;  %s1024_s24 = sadd.s32 4294967295, %s955_s23   ;;  %s955_s23 = sphi %s1003_s23, %s31_s23   ;;  %s951_s22 = sphi %s1001_s22, %s1272_s22   ;;  %s947_s21 = sphi %s999_s21, %s1271_s21   ;;  %s943_s20 = sphi %s997_s20, %s1270_s20   ;;  %s939_s19 = sphi %s995_s19, %s1274_s19   ;;  %s935_s18 = sphi %s993_s18, %s1273_s18  }
   0xf   : > { %1256 = sst [smem:[#allocation19_spill]] %s951_s22  ;;  %s616_s25 = sadd.s32 4294967294, %s955_s23  }
  0x10   : > { %1257 = sst [smem:[#allocation20_spill]] %s955_s23  ;;  %s43_s26 = sadd.s32 1, %s951_s22 }
  0x11   : > { %s52_s27 = sadd.s32 1, %s943_s20  ;;  %p45_p0 = scmp.ge.s32.totalorder %s43_s26, 2 }
  0x12   : > { %p59_p1 = scmp.ne.s32.totalorder %s943_s20, %s939_s19  ;;  %p60_p2 = scmp.eq.s32.totalorder %s955_s23, 0 }
  0x13   : > { %p65_p3 = scmp.ne.s32.totalorder %s939_s19, %s935_s18  ;;  %s1276_s26 = smov (%p45_p0, %s43_s26), 0 }
  0x14   : > { %1258 = sst [smem:[#allocation21_spill]] %s1276_s26  ;;  %p1036_p4 = por %p60_p2, %p59_p1 }
  0x15   : > { %p66_p5 = scmp.eq.s32.totalorder %s1024_s24, 0  ;;  %s47_s29 = ssub.s32 %s951_s22, %s1276_s26 }
  0x16   : > { %p169_p6 = scmp.eq.s32.totalorder %s1024_s24, 1  ;;  %p50_p7 = scmp.eq.s32.totalorder %s47_s29, 0 }
  0x17   : > { %p1044_p8 = por %p66_p5, %p65_p3  ;;  %p175_p10 = scmp.eq.s32.totalorder %s616_s25, 1 }
  0x18   : > { %p1048_p9 = por %p169_p6, %p59_p1  ;;  %p673_p13 = scmp.lt.s32.totalorder %s955_s23, 2 }
  0x19   : > { %s1053_s7 = scalar_select %p50_p7, %s943_s20, %s52_s27  }
  0x1a   : > { %p1055_p11 = por %p175_p10, %p65_p3  ;;  %s1062_s9 = sand.u32 1, %s943_s20  }
  0x1b   : > { %1262 = sst [smem:[#allocation22_spill]] %s1053_s7  ;;  %s1065_s10 = sshll.u32 %s1062_s9, 3 }
  0x1c   : > { %s1068_s11 = sshll.u32 %s951_s22, 7  ;;  %p1072_p0 = pnand %p673_p13, %p1036_p4 }
  0x1d   : > { %s240_s13 = sand.u32 1, %s955_s23   ;;  %s1265_s1 = sld [smem:[#allocation23_spill]] }
  0x1e   : > { %s244_s17 = scalar_lea.vmem [#allocation5], %s1065_s10  ;;  %p627_p1 = scmp.ge.s32.totalorder %s955_s23, 1 }
  0x1f   : > { %s252_s25 = sshll.u32 %s244_s17, 4  ;;  %p293_p2 = scmp.lt.s32.totalorder %s955_s23, 3  ;;  %s253_s25 = int_to_ptr.vmem [resolvable:$true] %s252_s25 }
  0x20   : > { %s1084_s27 = scalar_lea.sflag [#allocation6], %s240_s13  ;;  %p727_p3 = pneg %p1072_p0 }
  0x21   : > { %s738_s28 = scalar_lea.vmem %s253_s25, 128  ;;  %s957_s29 = smov [#allocation5]  }
  0x22   : > { %p739_p4 = scmp.ne.s32.totalorder %s253_s25, %s738_s28  ;;  %s743_s26 = sshll.u32 %s957_s29, 4  ;;  %s744_s26 = int_to_ptr.vmem [resolvable:$false] %s743_s26 }
  0x23   : > { %s250_s16 = scalar_lea.hbm %s1265_s1, %s1068_s11  ;;  %s745_s14 = scalar_lea.vmem %s744_s26, 256 }
  0x24   : > { %p741_p5 = pnand %p739_p4, %p727_p3  ;;  %p746_p7 = scmp.lt.s32.totalorder %s253_s25, %s744_s26 }
  0x25   : > { %p747_p10 = scmp.lt.s32.totalorder %s745_s14, %s738_s28 }
  0x26   : > { %p742_p6 = pneg %p741_p5 }
  0x27   : > { %p748_p13 = por %p747_p10, %p746_p7 }
  0x29   : > { %p749_p12 = pnand %p748_p13, %p742_p6 }
  0x2b   : > { %752 = shalt.err (!%p749_p12)
}
  0x2c   : > { %659 = dma.hbm_to_vmem [thread:$0]  (!%p1072_p0), %s250_s16, 128, %s253_s25, %s1084_s27  }
  0x2d   : > { %p1098_p4 = pnand %p627_p1, %p293_p2  ;;  %s231_s17 = scalar_lea.hbm %s1243_s0, %s1068_s11 }
  0x2e   : > { %s225_s28 = scalar_lea.vmem [#allocation2], %s1065_s10  ;;  %s268_s22 = scalar_lea.hbm %s1245_s2, %s1068_s11 }
  0x2f   : > { %s233_s29 = sshll.u32 %s225_s28, 4  ;;  %s222_s7 = scalar_lea.sflag [#allocation3], %s1062_s9  ;;  %s234_s29 = int_to_ptr.vmem [resolvable:$true] %s233_s29 }
  0x30   : > { %s766_s20 = scalar_lea.vmem %s234_s29, 128  ;;  %s958_s16 = smov [#allocation2]  }
  0x31   : > { %p767_p12 = scmp.ne.s32.totalorder %s234_s29, %s766_s20  ;;  %s771_s25 = sshll.u32 %s958_s16, 4  ;;  %s772_s25 = int_to_ptr.vmem [resolvable:$false] %s771_s25 }
  0x32   : > { %s773_s23 = scalar_lea.vmem %s772_s25, 256  ;;  %p774_p5 = scmp.lt.s32.totalorder %s234_s29, %s772_s25 }
  0x33   : > { %p769_p1 = pnand %p767_p12, %p727_p3  ;;  %p775_p6 = scmp.lt.s32.totalorder %s773_s23, %s766_s20 }
  0x35   : > { %p770_p2 = pneg %p769_p1  ;;  %p776_p7 = por %p775_p6, %p774_p5 }
  0x37   : > { %p777_p10 = pnand %p776_p7, %p770_p2 }
  0x39   : > { %780 = shalt.err (!%p777_p10)
}
  0x3a   : > { %656 = dma.hbm_to_vmem [thread:$0]  (!%p1072_p0), %s231_s17, 128, %s234_s29, %s222_s7  }
  0x3b   : > { %s263_s1 = scalar_lea.vmem [#allocation7], %s1065_s10  ;;  %s959_s28 = smov [#allocation7]  }
  0x3c   : > { %s270_s26 = sshll.u32 %s263_s1, 4  ;;  %s799_s14 = sshll.u32 %s959_s28, 4  ;;  %s271_s26 = int_to_ptr.vmem [resolvable:$true] %s270_s26  ;;  %s800_s14 = int_to_ptr.vmem [resolvable:$false] %s799_s14 }
  0x3d   : > { %s794_s15 = scalar_lea.vmem %s271_s26, 128  ;;  %s801_s20 = scalar_lea.vmem %s800_s14, 256 }
  0x3e   : > { %p795_p13 = scmp.ne.s32.totalorder %s271_s26, %s794_s15  ;;  %p802_p2 = scmp.lt.s32.totalorder %s271_s26, %s800_s14 }
  0x3f   : > { %p803_p5 = scmp.lt.s32.totalorder %s801_s20, %s794_s15 }
  0x40   : > { %p797_p12 = pnand %p795_p13, %p727_p3 }
  0x41   : > { %p804_p6 = por %p803_p5, %p802_p2 }
  0x42   : > { %p798_p1 = pneg %p797_p12 }
  0x44   : > { %p805_p7 = pnand %p804_p6, %p798_p1 }
  0x46   : > { %808 = shalt.err (!%p805_p7)
}
  0x47   : > { %662 = dma.hbm_to_vmem [thread:$0]  (!%p1072_p0), %s268_s22, 128, %s271_s26, %s1084_s27  }
  0x48   : > { %s286_s16 = scalar_lea.hbm %s1246_s3, %s1068_s11  ;;  %s281_s25 = scalar_lea.vmem [#allocation8], %s1065_s10 }
  0x49   : > { %s288_s1 = sshll.u32 %s281_s25, 4  ;;  %s278_s15 = scalar_lea.sflag [#allocation9], %s1062_s9  ;;  %s289_s1 = int_to_ptr.vmem [resolvable:$true] %s288_s1 }
  0x4a   : > { %s822_s28 = scalar_lea.vmem %s289_s1, 128  ;;  %s960_s14 = smov [#allocation8]  }
  0x4b   : > { %p823_p10 = scmp.ne.s32.totalorder %s289_s1, %s822_s28  ;;  %s827_s20 = sshll.u32 %s960_s14, 4  ;;  %s828_s20 = int_to_ptr.vmem [resolvable:$false] %s827_s20 }
  0x4c   : > { %s829_s23 = scalar_lea.vmem %s828_s20, 256  ;;  %p830_p1 = scmp.lt.s32.totalorder %s289_s1, %s828_s20 }
  0x4d   : > { %p825_p13 = pnand %p823_p10, %p727_p3  ;;  %p831_p2 = scmp.lt.s32.totalorder %s829_s23, %s822_s28 }
  0x4f   : > { %p826_p12 = pneg %p825_p13  ;;  %p832_p5 = por %p831_p2, %p830_p1 }
  0x51   : > { %p833_p6 = pnand %p832_p5, %p826_p12 }
  0x53   : > { %836 = shalt.err (!%p833_p6)
}
  0x54   : > { %665 = dma.hbm_to_vmem [thread:$0]  (!%p1072_p0), %s286_s16, 128, %s289_s1, %s278_s15  }
  0x55   : > { %297 = sbr.rel (%p1098_p4) target bundleno = 144 (0x90), region = 36  ;;  %s1143_s22 = sand.u32 (!%p1098_p4), 1, %s939_s19  }
  0x56   : > { %s1146_s9 = sshll.u32 (!%p1098_p4), %s1143_s22, 3  ;;  %s300_s10 = scalar_lea.sflag (!%p1098_p4), [#allocation3], %s1143_s22 }
  0x57   : > { %s303_s11 = scalar_lea.vmem (!%p1098_p4), [#allocation2], %s1146_s9 }
  0x5a   : > { %914 = dma.done.wait (%p1044_p8), %s300_s10, 128  }
  0x5b   : > { %916 = vsyncadd (%p1044_p8), %s300_s10, 4294967168  ;;  %s308_s12 = sand.u32 1, %s1024_s24   ;;  %s312_s13 = scalar_lea.vmem [#allocation5], %s1146_s9 }
  0x5c   : > { %s309_s27 = scalar_lea.sflag [#allocation6], %s308_s12 }
  0x5d   : > { %918 = dma.done.wait (%p1044_p8), %s309_s27, 256  }
  0x5e   : > { %920 = vsyncadd (%p1044_p8), %s309_s27, 4294967040  ;;  %s321_s26 = scalar_lea.vmem [#allocation7], %s1146_s9  ;;  %s327_s7 = scalar_lea.sflag [#allocation9], %s1143_s22 }
  0x5f   : > { %s330_s17 = scalar_lea.vmem [#allocation8], %s1146_s9 }
  0x60   : > { %922 = dma.done.wait (%p1044_p8), %s327_s7, 128  }
  0x61   : > { %924 = vsyncadd (%p1044_p8), %s327_s7, 4294967168  ;;  %s369_s24 = scalar_lea.vmem [#allocation10], %s1146_s9  ;;  %v377_v0 = vld [vmem:[%s303_s11] sm:$0xff]  ;;  %v378_v1 = vld [vmem:[%s312_s13] sm:$0xff]  ;;  %s637_s16 = sshll.u32 %s947_s21, 7 }
  0x62   : > { %s424_s29 = sshll.u32 %s369_s24, 4  ;;  %v379_v2 = vsub.f32 %v377_v0, %v378_v1  ;;  %v388_v3 = vld [vmem:[%s330_s17] sm:$0xff]  ;;  %s422_s1 = scalar_lea.hbm %s1247_s4, %s637_s16  ;;  %s1169_s29 = int_to_ptr.vmem [resolvable:$true] %s424_s29 }
  0x63   : > { %v390_v4 = vmul.f32 1.442695, %v388_v3  ;;  %s406_s15 = scalar_lea.sflag [#allocation4], %s1143_s22  ;;  %s837_s28 = scalar_lea.vmem %s1169_s29, 128 }
  0x64   : > { %v380_v5 = vand.u32 2147483647, %v379_v2  ;;  %p838_p8 = scmp.ne.s32.totalorder %s1169_s29, %s837_s28  ;;  %s961_s14 = smov [#allocation10]  }
  0x65   : > { %723 = vpow2.f32 %v390_v4  ;;  %s841_s20 = sshll.u32 %s961_s14, 4  ;;  %s842_s20 = int_to_ptr.vmem [resolvable:$false] %s841_s20 }
  0x66   : > { %386 = vst [vmem:[%s369_s24] sm:$0xff] %v380_v5  ;;  %p839_p0 = pnand %p838_p8, %p1048_p9  ;;  %s843_s23 = scalar_lea.vmem %s842_s20, 256 }
  0x67   : > { %p844_p4 = scmp.lt.s32.totalorder %s1169_s29, %s842_s20  ;;  %p845_p7 = scmp.lt.s32.totalorder %s843_s23, %s837_s28 }
  0x68   : > { %p840_p3 = pneg %p839_p0 }
  0x69   : > { %p846_p10 = por %p845_p7, %p844_p4 }
  0x6b   : > { %p847_p13 = pnand %p846_p10, %p840_p3 }
  0x6d   : > { %850 = shalt.err (!%p847_p13)
}
  0x6e   : > { %s851_s10 = scalar_lea.hbm %s422_s1, 128  ;;  %s855_s27 = scalar_lea.hbm %s1247_s4, 256 }
  0x6f   : > { %p852_p12 = scmp.ne.s32.totalorder %s422_s1, %s851_s10  ;;  %p856_p5 = scmp.lt.s32.totalorder %s422_s1, %s1247_s4 }
  0x70   : > { %p857_p6 = scmp.lt.s32.totalorder %s855_s27, %s851_s10 }
  0x71   : > { %p853_p1 = pnand %p852_p12, %p1048_p9 }
  0x72   : > { %p858_p8 = por %p857_p6, %p856_p5 }
  0x73   : > { %p854_p2 = pneg %p853_p1 }
  0x75   : > { %p859_p0 = pnand %p858_p8, %p854_p2 }
  0x77   : > { %862 = shalt.err (!%p859_p0)
}
  0x78   : > { %649 = dma.vmem_to_hbm [thread:$0]  (%p1048_p9), %s1169_s29, 128, %s422_s1, %s406_s15   ;;  %v387_v6 = vld [vmem:[%s321_s26] sm:$0xff]  ;;  %v724_v8 = vpop.eup %723 }
  0x79   : > { %v389_v7 = vmul.f32 %v387_v6, %v387_v6  ;;  %s376_s17 = scalar_lea.vmem [#allocation11], %s1146_s9  ;;  %s435_s29 = scalar_lea.hbm %s1248_s5, %s637_s16 }
  0x7a   : > { %s437_s24 = sshll.u32 %s376_s17, 4  ;;  %s411_s26 = scalar_lea.sflag [#allocation12], %s1143_s22  ;;  %s1196_s24 = int_to_ptr.vmem [resolvable:$true] %s437_s24 }
  0x7b   : > { %v392_v9 = vadd.f32 %v724_v8, %v389_v7  ;;  %s863_s1 = scalar_lea.vmem %s1196_s24, 128  ;;  %s962_s9 = smov [#allocation11]  }
  0x7c   : > { %p864_p3 = scmp.ne.s32.totalorder %s1196_s24, %s863_s1  ;;  %s867_s15 = sshll.u32 %s962_s9, 4  ;;  %s868_s15 = int_to_ptr.vmem [resolvable:$false] %s867_s15 }
  0x7d   : > { %v634_v10 = vadd.f32 -1.0, %v392_v9  ;;  %s869_s28 = scalar_lea.vmem %s868_s15, 256  ;;  %p870_p10 = scmp.lt.s32.totalorder %s1196_s24, %s868_s15 }
  0x7e   : > { %p865_p4 = pnand %p864_p3, %p1048_p9  ;;  %p871_p13 = scmp.lt.s32.totalorder %s869_s28, %s863_s1 }
  0x7f   : > { %v394_v11 = vsub.f32 %v634_v10, %v388_v3 }
  0x80   : > { %p866_p7 = pneg %p865_p4  ;;  %p872_p12 = por %p871_p13, %p870_p10 }
  0x81   : > { %v395_v12 = vmul.f32 0.5, %v394_v11 }
  0x82   : > { %p873_p1 = pnand %p872_p12, %p866_p7 }
  0x83   : > { %397 = vst [vmem:[%s376_s17] sm:$0xff] %v395_v12 }
  0x84   : > { %876 = shalt.err (!%p873_p1)
}
  0x85   : > { %s877_s21 = scalar_lea.hbm %s435_s29, 128  ;;  %s881_s14 = scalar_lea.hbm %s1248_s5, 256 }
  0x86   : > { %p878_p2 = scmp.ne.s32.totalorder %s435_s29, %s877_s21  ;;  %p882_p8 = scmp.lt.s32.totalorder %s435_s29, %s1248_s5 }
  0x87   : > { %p883_p0 = scmp.lt.s32.totalorder %s881_s14, %s877_s21 }
  0x88   : > { %p879_p5 = pnand %p878_p2, %p1048_p9 }
  0x89   : > { %p884_p3 = por %p883_p0, %p882_p8 }
  0x8a   : > { %p880_p6 = pneg %p879_p5 }
  0x8c   : > { %p885_p4 = pnand %p884_p3, %p880_p6 }
  0x8e   : > { %888 = shalt.err (!%p885_p4)
}
  0x8f   : > { %650 = dma.vmem_to_hbm [thread:$0]  (%p1048_p9), %s1196_s24, 128, %s435_s29, %s411_s26  }
  0x90 PF: > { %s1267_s10 = sld [smem:[#allocation20_spill]]  ;;  %s449_s11 = sand.u32 1, %s935_s18  }
  0x91   : > { %s450_s12 = scalar_lea.sflag [#allocation4], %s449_s11 }
  0x96   : > { %p1268_p7 = scmp.ge.s32.totalorder %s1267_s10, 2 }
  0x98   : > { %p667_p10 = pnand %p1268_p7, %p1055_p11 }
  0x9a   : > { %p668_p13 = pneg %p667_p10 }
  0x9c   : > { %926 = dma.done.wait (%p668_p13), %s450_s12, 128  }
  0x9d   : > { %928 = vsyncadd (%p668_p13), %s450_s12, 4294967168  ;;  %s459_s27 = scalar_lea.sflag [#allocation12], %s449_s11 }
  0x9e   : > { %930 = dma.done.wait (%p668_p13), %s459_s27, 128  }
  0x9f   : > { %932 = vsyncadd (%p668_p13), %s459_s27, 4294967168  ;;  %s31_s23 = sadd.s32 1, %s1267_s10   ;;  %s1269_s6 = sld [smem:[#allocation18_spill]] }
  0xa0   : > { %p28_p12 = scmp.ge.s32.totalorder %s31_s23, 4   ;;  %s1270_s20 = sld [smem:[#allocation22_spill]] }
  0xa1   : > { %s1271_s21 = sld [smem:[#allocation19_spill]]  ;;  %s1273_s18 = smov %s939_s19 }
  0xa2   : > { %s1272_s22 = sld [smem:[#allocation21_spill]]  ;;  %30 = sbr.rel (!%p28_p12) target bundleno = 14 (0xe), region = 143 }
  0xa5   : > { %s1274_s19 = smov %s1269_s6 }
  0xa7   :  { %464 = vsyncpa [#allocation3], 1 }
  0xa8   :  { %466 = vsyncpa [#allocation3 + $0x1], 1 }
  0xa9   :  { %467 = vsyncpa [#allocation6], 1 }
  0xaa   :  { %469 = vsyncpa [#allocation6 + $0x1], 1 }
  0xab   :  { %470 = vsyncpa [#allocation9], 1 }
  0xac   :  { %472 = vsyncpa [#allocation9 + $0x1], 1 }
  0xad   :  { %473 = vsyncpa [#allocation4], 1 }
  0xae   :  { %475 = vsyncpa [#allocation4 + $0x1], 1 }
  0xaf   :  { %476 = vsyncpa [#allocation12], 1 }
  0xb0   :  { %478 = vsyncpa [#allocation12 + $0x1], 1 }

</bundles_post_ra>
